<compile_context>
chip_gen: v6e
topology: v6e:2x2x1
jax: 0.10.0
libtpu: 0.0.40
codegen_flags: <defaults>
</compile_context>

<pallas_src>
import functools

import jax
import jax.numpy as jnp
from jax import lax
from jax.experimental import pallas as pl
from jax.experimental.pallas import tpu as pltpu


def _attn_kernel(*refs, apply_mask, approx_softmax):
    if apply_mask:
        (out_ref, enc_ref, mask_ref, w_in_ref, w_ct_ref, w_ht_ref, b_ref,
         y_ref, attn_ref) = refs
    else:
        (out_ref, enc_ref, w_in_ref, w_ct_ref, w_ht_ref, b_ref,
         y_ref, attn_ref) = refs
        mask_ref = None

    out_b = out_ref[...]                      # (Bb, Ty, D)   native dtype
    enc_b = enc_ref[...]                      # (Bb, Tx, 2E)  native dtype
    w_in = w_in_ref[...]                      # (D, 2E)
    w_ct = w_ct_ref[...]                      # (2E, D) == W_out[:, :2E].T
    w_ht = w_ht_ref[...]                      # (D, D)  == W_out[:, 2E:].T
    bias = b_ref[...].astype(jnp.float32)     # (1, D)

    bb, ty, d = out_b.shape
    two_e = enc_b.shape[2]

    prec = lax.Precision.HIGHEST  # exact f32 parity; bf16 inputs still run bf16 MXU

    # score = output @ W_in @ enc^T (reordered): shared projection folded over batch.
    out_2d = out_b.reshape(bb * ty, d)
    q = jnp.dot(out_2d, w_in, preferred_element_type=jnp.float32,
                precision=prec)                                  # (Bb*Ty, 2E)
    q = q.astype(out_b.dtype).reshape(bb, ty, two_e)
    score = jnp.einsum("bqe,bke->bqk", q, enc_b,
                       preferred_element_type=jnp.float32,
                       precision=prec)                           # (Bb, Ty, Tx) f32

    if apply_mask:
        # Only reached when the caller explicitly opts in (the reference module
        # discards the masked_fill result, so default forward ignores the mask).
        score = jnp.where(mask_ref[...] != 0, jnp.float32(-1e16), score)

    # Softmax over the key axis, f32 on the VPU/EUP.
    m = jnp.max(score, axis=-1, keepdims=True)
    e = jnp.exp(score - m)
    attn = e * pl.reciprocal(jnp.sum(e, axis=-1, keepdims=True),
                             approx=approx_softmax)              # (Bb, Ty, Tx)

    # ct = attn @ enc ; y = tanh(ct @ W_ct^T + out @ W_ht^T + b)  (concat folded).
    ct = jnp.einsum("bqk,bke->bqe", attn.astype(enc_b.dtype), enc_b,
                    preferred_element_type=jnp.float32, precision=prec)
    ct_2d = ct.astype(w_ct.dtype).reshape(bb * ty, two_e)
    lin = (jnp.dot(ct_2d, w_ct, preferred_element_type=jnp.float32,
                   precision=prec)
           + jnp.dot(out_2d, w_ht, preferred_element_type=jnp.float32,
                     precision=prec)
           + bias)                                               # (Bb*Ty, D)

    y_ref[...] = jnp.tanh(lin).reshape(bb, ty, d).astype(y_ref.dtype)
    attn_ref[...] = attn.astype(attn_ref.dtype)


def _pick_block_b(B, Ty):
    """Fold batches per grid step up to ~128 matmul rows, keeping >=2 grid
    steps whenever B allows it (v7x megacore)."""
    target = max(1, -(-128 // Ty))
    cap = max(1, B // 2) if B > 1 else 1
    limit = max(1, min(target, cap))
    bb = 1
    for div in range(1, B + 1):
        if B % div == 0 and div <= limit:
            bb = div
    return bb


def attn_forward(output, encoder_out, mask, w_in, w_out, b_out, *,
                 apply_mask=False, block_b=None, approx_softmax=False):
    B, Ty, D = output.shape
    B2, Tx, two_e = encoder_out.shape
    assert B2 == B
    assert w_in.shape == (D, two_e)
    assert w_out.shape == (D, two_e + D)

    bb = block_b if block_b is not None else _pick_block_b(B, Ty)
    assert B % bb == 0, "block_b must divide the batch size"

    # Host-side, once (not per grid step): split + transpose linear_out weight.
    w_ct_t = jnp.transpose(w_out[:, :two_e])      # (2E, D)
    w_ht_t = jnp.transpose(w_out[:, two_e:])      # (D, D)
    b_row = jnp.reshape(b_out, (1, D))

    attn_dtype = output.dtype                     # torch softmax keeps input dtype

    in_specs = [
        pl.BlockSpec((bb, Ty, D), lambda i: (i, 0, 0)),         # output
        pl.BlockSpec((bb, Tx, two_e), lambda i: (i, 0, 0)),     # encoder_out
    ]
    args = [output, encoder_out]
    if apply_mask:
        in_specs.append(pl.BlockSpec((bb, Ty, Tx), lambda i: (i, 0, 0)))
        args.append(mask.astype(jnp.int32))
    in_specs += [
        pl.BlockSpec((D, two_e), lambda i: (0, 0)),             # W_in
        pl.BlockSpec((two_e, D), lambda i: (0, 0)),             # W_out[:, :2E].T
        pl.BlockSpec((D, D), lambda i: (0, 0)),                 # W_out[:, 2E:].T
        pl.BlockSpec((1, D), lambda i: (0, 0)),                 # bias
    ]
    args += [w_in, w_ct_t, w_ht_t, b_row]

    # Rough per-step VMEM estimate (double-buffered blocks + f32 temporaries);
    # set an explicit scoped-VMEM limit (v7x has only 64 MiB physical).
    in_item = jnp.dtype(output.dtype).itemsize
    w_item = jnp.dtype(w_in.dtype).itemsize
    blk = 2 * (bb * Ty * D + bb * Tx * two_e + bb * Ty * D) * in_item
    blk += 2 * bb * Ty * Tx * jnp.dtype(attn_dtype).itemsize
    blk += (D * two_e + two_e * D + D * D + D) * w_item
    blk += 4 * bb * Ty * max(Tx, two_e, D) * 4
    vmem_limit = int(min(64 * 1024 * 1024, max(32 * 1024 * 1024, 4 * blk)))

    kernel = functools.partial(_attn_kernel, apply_mask=apply_mask,
                               approx_softmax=approx_softmax)
    y, attn = pl.pallas_call(
        kernel,
        out_shape=(
            jax.ShapeDtypeStruct((B, Ty, D), output.dtype),
            jax.ShapeDtypeStruct((B, Ty, Tx), attn_dtype),
        ),
        grid=(B // bb,),
        in_specs=in_specs,
        out_specs=(
            pl.BlockSpec((bb, Ty, D), lambda i: (i, 0, 0)),
            pl.BlockSpec((bb, Ty, Tx), lambda i: (i, 0, 0)),
        ),
        compiler_params=pltpu.CompilerParams(
            dimension_semantics=("parallel",),
            vmem_limit_bytes=vmem_limit,
        ),
    )(*args)
    return y, attn


def _reference(output, encoder_out, mask, w_in, w_out, b_out):
    """Pure-JAX mirror of the PyTorch forward (mask discarded, as in the original)."""
    prec = lax.Precision.HIGHEST
    enc1 = jnp.einsum("bke,de->bkd", encoder_out, w_in, precision=prec)
    score = jnp.einsum("bqd,bkd->bqk", output, enc1, precision=prec)
    attn = jax.nn.softmax(score, axis=2)
    ct = jnp.einsum("bqk,bke->bqe", attn, encoder_out, precision=prec)
    cat = jnp.concatenate([ct, output], axis=2)
    y = jnp.tanh(jnp.einsum("bqf,df->bqd", cat, w_out, precision=prec)
                 + b_out[None, None, :])
    return y, attn


if __name__ == "__main__":
    # Small shapes consistent with the module's forward.
    B = 2
    enc_hidden = 16          # -> encoder feature size 2E = 32
    dec_hidden = 32          # D
    Ty = 8                   # decoder (query) length
    Tx = 16                  # encoder (key) length
    two_e = 2 * enc_hidden

    key = jax.random.PRNGKey(0)
    k0, k1, k2, k3, k4, k5 = jax.random.split(key, 6)

    output = jax.random.normal(k0, (B, Ty, dec_hidden), dtype=jnp.float32)
    encoder_out = jax.random.normal(k1, (B, Tx, two_e), dtype=jnp.float32)
    # Boolean mask (nonzero == masked). Per the original module it has no effect
    # on the forward output, but it remains part of the interface.
    mask = (jax.random.uniform(k2, (B, Ty, Tx)) > 0.8)
    mask = mask.at[:, :, 0].set(False)   # keep every row at least partly unmasked

    # Deterministic parameter init (Linear weight shapes follow PyTorch (out, in)).
    w_in = 0.1 * jax.random.normal(k3, (dec_hidden, two_e), dtype=jnp.float32)
    w_out = 0.1 * jax.random.normal(k4, (dec_hidden, two_e + dec_hidden),
                                    dtype=jnp.float32)
    b_out = 0.1 * jax.random.normal(k5, (dec_hidden,), dtype=jnp.float32)

    # Default path: faithful to the PyTorch module (mask ignored, not even DMA'd).
    y, attn = attn_forward(output, encoder_out, mask, w_in, w_out, b_out)
    jax.block_until_ready((y, attn))

    y_ref, attn_ref = _reference(output, encoder_out, mask, w_in, w_out, b_out)
    assert y.shape == (B, Ty, dec_hidden)
    assert attn.shape == (B, Ty, Tx)
    assert jnp.allclose(y, y_ref, atol=1e-4, rtol=1e-4)
    assert jnp.allclose(attn.astype(jnp.float32), attn_ref, atol=1e-4, rtol=1e-4)

    # Optional masking path (what the PyTorch author likely intended): masked
    # positions must receive (numerically) zero attention.
    y_m, attn_m = attn_forward(output, encoder_out, mask, w_in, w_out, b_out,
                               apply_mask=True)
    jax.block_until_ready((y_m, attn_m))
    assert bool(jnp.all(jnp.isfinite(y_m)))
    assert float(jnp.max(jnp.where(mask, attn_m.astype(jnp.float32), 0.0))) < 1e-6

    print("KERNEL_OK")
</pallas_src>

<mosaic_0001>
module attributes {stable_mosaic.version = 11 : i64} {
  func.func @_attn_kernel(%arg0: i32, %arg1: memref<1x8x32xf32, #tpu.memory_space<vmem>>, %arg2: memref<1x16x32xf32, #tpu.memory_space<vmem>>, %arg3: memref<32x32xf32, #tpu.memory_space<vmem>>, %arg4: memref<32x32xf32, #tpu.memory_space<vmem>>, %arg5: memref<32x32xf32, #tpu.memory_space<vmem>>, %arg6: memref<1x32xf32, #tpu.memory_space<vmem>>, %arg7: memref<1x8x32xf32, #tpu.memory_space<vmem>>, %arg8: memref<1x8x16xf32, #tpu.memory_space<vmem>>) attributes {dimension_semantics = [#tpu.dimension_semantics<parallel>], iteration_bounds = array<i64: 2>, scalar_prefetch = 0 : i64, scratch_operands = 0 : i64, tpu.core_type = #tpu.core_type<tc>, window_params = [{transform_indices = @transform_0, window_bounds = array<i64: 1, 8, 32>}, {transform_indices = @transform_1, window_bounds = array<i64: 1, 16, 32>}, {pipeline_mode = #tpu.pipeline_mode<synchronous>, transform_indices = @transform_2, window_bounds = array<i64: 32, 32>}, {pipeline_mode = #tpu.pipeline_mode<synchronous>, transform_indices = @transform_3, window_bounds = array<i64: 32, 32>}, {pipeline_mode = #tpu.pipeline_mode<synchronous>, transform_indices = @transform_4, window_bounds = array<i64: 32, 32>}, {pipeline_mode = #tpu.pipeline_mode<synchronous>, transform_indices = @transform_5, window_bounds = array<i64: 1, 32>}, {transform_indices = @transform_6, window_bounds = array<i64: 1, 8, 32>}, {transform_indices = @transform_7, window_bounds = array<i64: 1, 8, 16>}]} {
    %c0 = arith.constant 0 : index
    %c0_0 = arith.constant 0 : index
    %c0_1 = arith.constant 0 : index
    %0 = vector.load %arg1[%c0, %c0_0, %c0_1] : memref<1x8x32xf32, #tpu.memory_space<vmem>>, vector<1x8x32xf32>
    %c0_2 = arith.constant 0 : index
    %c0_3 = arith.constant 0 : index
    %c0_4 = arith.constant 0 : index
    %1 = vector.load %arg2[%c0_2, %c0_3, %c0_4] : memref<1x16x32xf32, #tpu.memory_space<vmem>>, vector<1x16x32xf32>
    %c0_5 = arith.constant 0 : index
    %c0_6 = arith.constant 0 : index
    %2 = vector.load %arg3[%c0_5, %c0_6] : memref<32x32xf32, #tpu.memory_space<vmem>>, vector<32x32xf32>
    %c0_7 = arith.constant 0 : index
    %c0_8 = arith.constant 0 : index
    %3 = vector.load %arg4[%c0_7, %c0_8] : memref<32x32xf32, #tpu.memory_space<vmem>>, vector<32x32xf32>
    %c0_9 = arith.constant 0 : index
    %c0_10 = arith.constant 0 : index
    %4 = vector.load %arg5[%c0_9, %c0_10] : memref<32x32xf32, #tpu.memory_space<vmem>>, vector<32x32xf32>
    %c0_11 = arith.constant 0 : index
    %c0_12 = arith.constant 0 : index
    %5 = vector.load %arg6[%c0_11, %c0_12] : memref<1x32xf32, #tpu.memory_space<vmem>>, vector<1x32xf32>
    %6 = vector.shape_cast %0 : vector<1x8x32xf32> to vector<8x32xf32>
    %cst = arith.constant dense<0.000000e+00> : vector<8x32xf32>
    %7 = tpu.matmul %6, %2, %cst {dimension_numbers = #tpu.dot_dimension_numbers<[1], [0], [0], [1], [0, 0, 1, 1], [], []>, precision = #tpu.contract_precision<fp32>} : vector<8x32xf32>, vector<32x32xf32>, vector<8x32xf32> -> vector<8x32xf32>
    %8 = vector.shape_cast %7 : vector<8x32xf32> to vector<1x8x32xf32>
    "tpu.trace_start"() <{level = 10 : i32, message = "bqe,bke->bqk"}> : () -> ()
    %cst_13 = arith.constant dense<0.000000e+00> : vector<1x8x16xf32>
    %9 = tpu.matmul %8, %1, %cst_13 {dimension_numbers = #tpu.dot_dimension_numbers<[2], [2], [1], [1], [0, 0, 0, 1, 1, 1], [0], [0]>, precision = #tpu.contract_precision<fp32>} : vector<1x8x32xf32>, vector<1x16x32xf32>, vector<1x8x16xf32> -> vector<1x8x16xf32>
    "tpu.trace_stop"() : () -> ()
    %cst_14 = arith.constant dense<0xFF800000> : vector<1x8xf32>
    %10 = vector.multi_reduction <maximumf>, %9, %cst_14 [2] : vector<1x8x16xf32> to vector<1x8xf32>
    %11 = vector.shape_cast %10 : vector<1x8xf32> to vector<1x8x1xf32>
    %12 = vector.broadcast %11 : vector<1x8x1xf32> to vector<1x8x16xf32>
    %13 = arith.subf %9, %12 : vector<1x8x16xf32>
    %14 = math.exp %13 : vector<1x8x16xf32>
    %cst_15 = arith.constant dense<0.000000e+00> : vector<1x8xf32>
    %15 = vector.multi_reduction <add>, %14, %cst_15 [2] : vector<1x8x16xf32> to vector<1x8xf32>
    %16 = vector.shape_cast %15 : vector<1x8xf32> to vector<1x8x1xf32>
    %17 = tpu.reciprocal %16 : vector<1x8x1xf32> -> vector<1x8x1xf32>
    %18 = vector.broadcast %17 : vector<1x8x1xf32> to vector<1x8x16xf32>
    %19 = arith.mulf %14, %18 : vector<1x8x16xf32>
    "tpu.trace_start"() <{level = 10 : i32, message = "bqk,bke->bqe"}> : () -> ()
    %cst_16 = arith.constant dense<0.000000e+00> : vector<1x8x32xf32>
    %20 = tpu.matmul %19, %1, %cst_16 {dimension_numbers = #tpu.dot_dimension_numbers<[2], [1], [1], [2], [0, 0, 0, 1, 1, 2], [0], [0]>, precision = #tpu.contract_precision<fp32>} : vector<1x8x16xf32>, vector<1x16x32xf32>, vector<1x8x32xf32> -> vector<1x8x32xf32>
    "tpu.trace_stop"() : () -> ()
    %21 = vector.shape_cast %20 : vector<1x8x32xf32> to vector<8x32xf32>
    %cst_17 = arith.constant dense<0.000000e+00> : vector<8x32xf32>
    %22 = tpu.matmul %21, %3, %cst_17 {dimension_numbers = #tpu.dot_dimension_numbers<[1], [0], [0], [1], [0, 0, 1, 1], [], []>, precision = #tpu.contract_precision<fp32>} : vector<8x32xf32>, vector<32x32xf32>, vector<8x32xf32> -> vector<8x32xf32>
    %cst_18 = arith.constant dense<0.000000e+00> : vector<8x32xf32>
    %23 = tpu.matmul %6, %4, %cst_18 {dimension_numbers = #tpu.dot_dimension_numbers<[1], [0], [0], [1], [0, 0, 1, 1], [], []>, precision = #tpu.contract_precision<fp32>} : vector<8x32xf32>, vector<32x32xf32>, vector<8x32xf32> -> vector<8x32xf32>
    %24 = arith.addf %22, %23 : vector<8x32xf32>
    %25 = vector.broadcast %5 : vector<1x32xf32> to vector<8x32xf32>
    %26 = arith.addf %24, %25 : vector<8x32xf32>
    %27 = math.tanh %26 : vector<8x32xf32>
    %28 = vector.shape_cast %27 : vector<8x32xf32> to vector<1x8x32xf32>
    %c0_19 = arith.constant 0 : index
    %c0_20 = arith.constant 0 : index
    %c0_21 = arith.constant 0 : index
    %29 = vector.load %arg7[%c0_19, %c0_20, %c0_21] : memref<1x8x32xf32, #tpu.memory_space<vmem>>, vector<1x8x32xf32>
    tpu.vector_store %arg7[%c0_19, %c0_20, %c0_21], %28 {strides = array<i32>} : memref<1x8x32xf32, #tpu.memory_space<vmem>>, vector<1x8x32xf32>,
    %c0_22 = arith.constant 0 : index
    %c0_23 = arith.constant 0 : index
    %c0_24 = arith.constant 0 : index
    %30 = vector.load %arg8[%c0_22, %c0_23, %c0_24] : memref<1x8x16xf32, #tpu.memory_space<vmem>>, vector<1x8x16xf32>
    tpu.vector_store %arg8[%c0_22, %c0_23, %c0_24], %19 {strides = array<i32>} : memref<1x8x16xf32, #tpu.memory_space<vmem>>, vector<1x8x16xf32>,
    return
  }
  func.func @transform_0(%arg0: i32) -> (i32, i32, i32) {
    %c0_i32 = arith.constant 0 : i32
    %c0_i32_0 = arith.constant 0 : i32
    %c0_i32_1 = arith.constant 0 : i32
    return %arg0, %c0_i32, %c0_i32_0 : i32, i32, i32
  }
  func.func @transform_1(%arg0: i32) -> (i32, i32, i32) {
    %c0_i32 = arith.constant 0 : i32
    %c0_i32_0 = arith.constant 0 : i32
    %c0_i32_1 = arith.constant 0 : i32
    return %arg0, %c0_i32, %c0_i32_0 : i32, i32, i32
  }
  func.func @transform_2(%arg0: i32) -> (i32, i32) {
    %c0_i32 = arith.constant 0 : i32
    %c0_i32_0 = arith.constant 0 : i32
    %c0_i32_1 = arith.constant 0 : i32
    return %c0_i32, %c0_i32_0 : i32, i32
  }
  func.func @transform_3(%arg0: i32) -> (i32, i32) {
    %c0_i32 = arith.constant 0 : i32
    %c0_i32_0 = arith.constant 0 : i32
    %c0_i32_1 = arith.constant 0 : i32
    return %c0_i32, %c0_i32_0 : i32, i32
  }
  func.func @transform_4(%arg0: i32) -> (i32, i32) {
    %c0_i32 = arith.constant 0 : i32
    %c0_i32_0 = arith.constant 0 : i32
    %c0_i32_1 = arith.constant 0 : i32
    return %c0_i32, %c0_i32_0 : i32, i32
  }
  func.func @transform_5(%arg0: i32) -> (i32, i32) {
    %c0_i32 = arith.constant 0 : i32
    %c0_i32_0 = arith.constant 0 : i32
    %c0_i32_1 = arith.constant 0 : i32
    return %c0_i32, %c0_i32_0 : i32, i32
  }
  func.func @transform_6(%arg0: i32) -> (i32, i32, i32) {
    %c0_i32 = arith.constant 0 : i32
    %c0_i32_0 = arith.constant 0 : i32
    %c0_i32_1 = arith.constant 0 : i32
    return %arg0, %c0_i32, %c0_i32_0 : i32, i32, i32
  }
  func.func @transform_7(%arg0: i32) -> (i32, i32, i32) {
    %c0_i32 = arith.constant 0 : i32
    %c0_i32_0 = arith.constant 0 : i32
    %c0_i32_1 = arith.constant 0 : i32
    return %arg0, %c0_i32, %c0_i32_0 : i32, i32, i32
  }
}

</mosaic_0001>

<bundles_post_ra>
// kernel: tpu_custom_call.1
= control target key start
LH: loop header
LB: loop body
LE: loop exit
PB: predicated region body
PF: predicated region fallthrough
CT: control target
= control target key end

     0   :  { %s4481_s0 = inlined_call_operand.hbm [shape: f32[2,8,32], index: 0, kind: input, shape index: {}]   ;;  %s4482_s1 = inlined_call_operand.hbm [shape: f32[2,16,32], index: 1, kind: input, shape index: {}]   ;;  %s4483_s2 = inlined_call_operand.hbm [shape: f32[32,32], index: 2, kind: input, shape index: {}]   ;;  %s4484_s3 = inlined_call_operand.hbm [shape: f32[32,32], index: 3, kind: input, shape index: {}]   ;;  %s4485_s4 = inlined_call_operand.hbm [shape: f32[32,32], index: 4, kind: input, shape index: {}]   ;;  %s4486_s5 = inlined_call_operand.vmem [shape: f32[1,32], index: 5, kind: input, shape index: {}]   ;;  %s4487_s6 = inlined_call_operand.hbm [shape: f32[2,8,32], index: 6, kind: output, shape index: {0}]   ;;  %s4488_s7 = inlined_call_operand.hbm [shape: f32[2,8,16], index: 7, kind: output, shape index: {1}]  }
   0x1   :  { %4495 = sst [smem:[#allocation20_spill]] %s4483_s2 }
   0x2   :  { %4496 = sst [smem:[#allocation21_spill]] %s4484_s3 }
   0x3   :  { %13 = vsyncpa [#allocation3], 0 }
   0x4   :  { %15 = vsyncpa [#allocation3 + $0x1], 0 }
   0x5   :  { %16 = vsyncpa [#allocation6], 0 }
   0x6   :  { %18 = vsyncpa [#allocation6 + $0x1], 0 }
   0x7   :  { %19 = vsyncpa [#allocation9], 0 }
   0x8   :  { %20 = vsyncpa [#allocation4], 0 }
   0x9   :  { %22 = vsyncpa [#allocation4 + $0x1], 0 }
   0xa   :  { %23 = vsyncpa [#allocation13], 0 }
   0xb   :  { %25 = vsyncpa [#allocation13 + $0x1], 0  ;;  %s3828_s24 = smov 0   ;;  %s3830_s25 = smov 0  }
   0xc   :  { %s3832_s26 = smov 0   ;;  %s3834_s27 = smov 0  }
   0xd LB: > { %s3849_s28 = sadd.s32 4294967295, %s3775_s27   ;;  %s3003_s29 = sadd.s32 4294967294, %s3775_s27   ;;  %s3775_s27 = sphi %s3834_s27, %s4519_s27   ;;  %s3771_s26 = sphi %s3832_s26, %s4518_s26   ;;  %s3767_s25 = sphi %s3830_s25, %s4517_s25   ;;  %s3763_s24 = sphi %s3828_s24, %s4516_s24  }
   0xe   : > { %p51_p0 = scmp.ne.s32.totalorder %s3767_s25, %s3763_s24  ;;  %p4489_p1 = scmp.eq.s32.totalorder %s3849_s28, 0 }
   0xf   : > { %p185_p2 = scmp.eq.s32.totalorder %s3849_s28, 1  ;;  %p191_p3 = scmp.eq.s32.totalorder %s3003_s29, 1 }
  0x10   : > { %p3858_p4 = por %p4489_p1, %p51_p0  ;;  %p3004_p5 = scmp.ge.s32.totalorder %s3775_s27, 1 }
  0x11   : > { %p3863_p6 = por %p191_p3, %p51_p0  ;;  %p224_p7 = scmp.lt.s32.totalorder %s3775_s27, 3 }
  0x12   : > { %s4497_s30 = scalar_select %p3858_p4, 1, 0 }
  0x13   : > { %s4498_s8 = scalar_select %p3863_p6, 1, 0 }
  0x14   : > { %p3868_p8 = pnand %p3004_p5, %p224_p7  ;;  %s3777_s10 = smov [#allocation7]  }
  0x15   : > { %s236_s11 = sshll.u32 %s3777_s10, 4  ;;  %s3778_s13 = smov [#allocation8]   ;;  %s237_s11 = int_to_ptr.vmem [resolvable:$true] %s236_s11 }
  0x16   : > { %s4499_s9 = scalar_select %p3868_p8, 1, 0 }
  0x17   : > { %p3458_p9 = pneg %p3868_p8  ;;  %s249_s14 = sshll.u32 %s3778_s13, 4  ;;  %s250_s14 = int_to_ptr.vmem [resolvable:$true] %s249_s14 }
  0x18   : > { %s3779_s15 = smov [#allocation10]   ;;  %s3546_s17 = scalar_lea.vmem %s237_s11, 512 }
  0x19   : > { %p3877_p11 = pnand %p3458_p9, %p4489_p1  ;;  %s262_s16 = sshll.u32 %s3779_s15, 4  ;;  %s263_s16 = int_to_ptr.vmem [resolvable:$true] %s262_s16 }
  0x1a   : > { %p3547_p13 = scmp.ne.s32.totalorder %s237_s11, %s3546_s17  ;;  %p3554_p5 = scmp.lt.s32.totalorder %s237_s11, %s237_s11 }
  0x1b   : > { %p3537_p12 = pneg %p3877_p11  ;;  %p3555_p7 = scmp.lt.s32.totalorder %s3546_s17, %s3546_s17 }
  0x1d   : > { %p3549_p0 = pnand %p3547_p13, %p3537_p12  ;;  %p3556_p9 = por %p3555_p7, %p3554_p5 }
  0x1f   : > { %p3550_p3 = pneg %p3549_p0 }
  0x21   : > { %p3557_p10 = pnand %p3556_p9, %p3550_p3 }
  0x23   : > { %3560 = shalt.err (!%p3557_p10)
}
  0x24   : > { %s4490_s18 = smov 128   ;;  %s4491_s19 = smov 8  }
  0x25   : > { %s4501_s2 = sld [smem:[#allocation20_spill]]  ;;  %s3572_s22 = scalar_lea.vmem %s250_s14, 512 }
  0x26   : > { %p3573_p13 = scmp.ne.s32.totalorder %s250_s14, %s3572_s22  ;;  %p3580_p3 = scmp.lt.s32.totalorder %s250_s14, %s250_s14 }
  0x27   : > { %p3581_p10 = scmp.lt.s32.totalorder %s3572_s22, %s3572_s22 }
  0x28   : > { %p3575_p0 = pnand %p3573_p13, %p3537_p12 }
  0x29   : > { %p3582_p7 = por %p3581_p10, %p3580_p3 }
  0x2a   : > { %p3576_p5 = pneg %p3575_p0 }
  0x2b   : > { %3461 = dma.hbm_to_vmem [thread:$0]  (!%p3877_p11), %s4501_s2, 512, %s237_s11, [#allocation6], %s4490_s18, %s4490_s18, %s4491_s19  }
  0x2c   : > { %p3583_p9 = pnand %p3582_p7, %p3576_p5 }
  0x2e   : > { %3586 = shalt.err (!%p3583_p9)
}
  0x2f   : > { %s4502_s3 = sld [smem:[#allocation21_spill]]  ;;  %s3598_s10 = scalar_lea.vmem %s263_s16, 512 }
  0x30   : > { %p3599_p1 = scmp.ne.s32.totalorder %s263_s16, %s3598_s10  ;;  %p3606_p3 = scmp.lt.s32.totalorder %s263_s16, %s263_s16 }
  0x31   : > { %p3607_p5 = scmp.lt.s32.totalorder %s3598_s10, %s3598_s10 }
  0x32   : > { %p3601_p13 = pnand %p3599_p1, %p3537_p12 }
  0x33   : > { %p3608_p10 = por %p3607_p5, %p3606_p3 }
  0x34   : > { %p3602_p0 = pneg %p3601_p13 }
  0x35   : > { %3464 = dma.hbm_to_vmem [thread:$0]  (!%p3877_p11), %s4502_s3, 512, %s250_s14, [#allocation9], %s4490_s18, %s4490_s18, %s4491_s19  }
  0x36   : > { %p3609_p7 = pnand %p3608_p10, %p3602_p0 }
  0x38   : > { %3612 = shalt.err (!%p3609_p7)
}
  0x39   : > { %3467 = dma.hbm_to_vmem [thread:$0]  (!%p3877_p11), %s4485_s4, 512, %s263_s16, [#allocation9], %s4490_s18, %s4490_s18, %s4491_s19  }
  0x3a   : > { %s3917_s14 = sadd.s32 1, %s3775_s27   ;;  %s38_s15 = sadd.s32 1, %s3771_s26 }
  0x3b   : > { %s35_s12 = ssub.s32 %s3775_s27, %s3917_s14  ;;  %p45_p12 = scmp.ne.s32.totalorder %s3771_s26, %s3767_s25 }
  0x3c   : > { %p36_p1 = scmp.eq.s32.totalorder %s35_s12, 0  ;;  %p46_p9 = scmp.eq.s32.totalorder %s3775_s27, 0 }
  0x3d   : > { %p3485_p13 = scmp.lt.s32.totalorder %s3775_s27, 2  ;;  %p3931_p3 = por %p185_p2, %p45_p12 }
  0x3e   : > { %s3927_s17 = scalar_select %p36_p1, %s3771_s26, %s38_s15  }
  0x3f   : > { %p47_p0 = por %p46_p9, %p45_p12  ;;  %s3936_s21 = sand.u32 1, %s3771_s26  }
  0x40   : > { %s4503_s20 = scalar_select %p3931_p3, 1, 0 }
  0x41   : > { %s3010_s16 = sshll.u32 %s3775_s27, 7  ;;  %s3009_s22 = sshll.u32 %s3936_s21, 3 }
  0x42   : > { %s3943_s10 = scalar_lea.hbm %s4481_s0, %s3010_s16  ;;  %s283_s11 = scalar_lea.vmem [#allocation2], %s3009_s22 }
  0x43   : > { %s290_s13 = sshll.u32 %s283_s11, 4  ;;  %p3945_p2 = pnand %p3485_p13, %p47_p0  ;;  %s291_s13 = int_to_ptr.vmem [resolvable:$true] %s290_s13 }
  0x44   : > { %s3011_s15 = sshll.u32 %s3936_s21, 4  ;;  %s280_s18 = scalar_lea.sflag [#allocation3], %s3936_s21 }
  0x45   : > { %s3613_s19 = scalar_lea.hbm %s3943_s10, 128  ;;  %p3615_p5 = pneg %p3945_p2 }
  0x46   : > { %p3614_p11 = scmp.ne.s32.totalorder %s3943_s10, %s3613_s19  ;;  %s3618_s23 = scalar_lea.hbm %s4481_s0, 256 }
  0x47   : > { %p3619_p1 = scmp.lt.s32.totalorder %s3943_s10, %s4481_s0  ;;  %p3620_p12 = scmp.lt.s32.totalorder %s3618_s23, %s3613_s19 }
  0x48   : > { %p3616_p10 = pnand %p3615_p5, %p3614_p11 }
  0x49   : > { %p3621_p9 = por %p3620_p12, %p3619_p1 }
  0x4a   : > { %p3617_p7 = pneg %p3616_p10 }
  0x4c   : > { %p3622_p13 = pnand %p3621_p9, %p3617_p7 }
  0x4e   : > { %3625 = shalt.err (!%p3622_p13)
}
  0x4f   : > { %s3626_s21 = scalar_lea.vmem %s291_s13, 128  ;;  %s3782_s2 = smov [#allocation2]  }
  0x50   : > { %p3627_p0 = scmp.ne.s32.totalorder %s291_s13, %s3626_s21  ;;  %s3631_s3 = sshll.u32 %s3782_s2, 4  ;;  %s3632_s3 = int_to_ptr.vmem [resolvable:$false] %s3631_s3 }
  0x51   : > { %s3633_s16 = scalar_lea.vmem %s3632_s3, 256  ;;  %p3634_p10 = scmp.lt.s32.totalorder %s291_s13, %s3632_s3 }
  0x52   : > { %p3629_p6 = pnand %p3627_p0, %p3615_p5  ;;  %p3635_p3 = scmp.lt.s32.totalorder %s3633_s16, %s3626_s21 }
  0x54   : > { %p3630_p11 = pneg %p3629_p6  ;;  %p3636_p4 = por %p3635_p3, %p3634_p10 }
  0x56   : > { %p3637_p8 = pnand %p3636_p4, %p3630_p11 }
  0x58   : > { %3640 = shalt.err (!%p3637_p8)
}
  0x59   : > { %3471 = dma.hbm_to_vmem [thread:$0]  (!%p3945_p2), %s3943_s10, 128, %s291_s13, %s280_s18  }
  0x5a   : > { %s301_s19 = scalar_lea.vmem [#allocation5], %s3011_s15  ;;  %s297_s23 = sand.u32 1, %s3775_s27  }
  0x5b   : > { %s308_s22 = sshll.u32 %s301_s19, 4  ;;  %s3029_s2 = sshll.u32 %s3775_s27, 8  ;;  %s3972_s22 = int_to_ptr.vmem [resolvable:$true] %s308_s22 }
  0x5c   : > { %s3978_s3 = scalar_lea.hbm %s4482_s1, %s3029_s2  ;;  %s298_s21 = scalar_lea.sflag [#allocation6], %s297_s23 }
  0x5d   : > { %s3641_s16 = scalar_lea.hbm %s3978_s3, 256  ;;  %s3646_s13 = scalar_lea.hbm %s4482_s1, 512 }
  0x5e   : > { %p3642_p4 = scmp.ne.s32.totalorder %s3978_s3, %s3641_s16  ;;  %p3647_p3 = scmp.lt.s32.totalorder %s3978_s3, %s4482_s1 }
  0x5f   : > { %p3648_p7 = scmp.lt.s32.totalorder %s3646_s13, %s3641_s16 }
  0x60   : > { %p3644_p6 = pnand %p3642_p4, %p3615_p5 }
  0x61   : > { %p3649_p1 = por %p3648_p7, %p3647_p3 }
  0x62   : > { %p3645_p8 = pneg %p3644_p6 }
  0x64   : > { %p3650_p12 = pnand %p3649_p1, %p3645_p8 }
  0x66   : > { %3653 = shalt.err (!%p3650_p12)
}
  0x67   : > { %s3654_s23 = scalar_lea.vmem %s3972_s22, 256  ;;  %s3783_s2 = smov [#allocation5]  }
  0x68   : > { %p3655_p9 = scmp.ne.s32.totalorder %s3972_s22, %s3654_s23  ;;  %s3659_s29 = sshll.u32 %s3783_s2, 4  ;;  %s3660_s29 = int_to_ptr.vmem [resolvable:$false] %s3659_s29 }
  0x69   : > { %s3661_s11 = scalar_lea.vmem %s3660_s29, 512  ;;  %p3662_p11 = scmp.lt.s32.totalorder %s3972_s22, %s3660_s29 }
  0x6a   : > { %p3657_p13 = pnand %p3655_p9, %p3615_p5  ;;  %p3663_p10 = scmp.lt.s32.totalorder %s3661_s11, %s3654_s23 }
  0x6c   : > { %p3658_p0 = pneg %p3657_p13  ;;  %p3664_p4 = por %p3663_p10, %p3662_p11 }
  0x6e   : > { %p3665_p6 = pnand %p3664_p4, %p3658_p0 }
  0x70   : > { %3668 = shalt.err (!%p3665_p6)
}
  0x71   : > { %s4505_s16 = smov 8   ;;  %s4506_s18 = smov 128  }
  0x72   : > { %3474 = dma.hbm_to_vmem [thread:$0]  (!%p3945_p2), %s3978_s3, 256, %s3972_s22, %s298_s21, %s4506_s18, %s4506_s18, %s4505_s16  }
  0x73   : > { %p4507_p5 = scmp.ne.s32.totalorder %s4499_s9, 0 }
  0x74   : > { %s4008_s10 = sand.u32 (!%p4507_p5), 1, %s3767_s25   ;;  %p4508_p8 = scmp.ne.s32.totalorder (!%p4507_p5), %s4497_s30, 0 }
  0x75   : > { %320 = sbr.rel (%p4507_p5) target bundleno = 1372 (0x55c), region = 44  ;;  %s4011_s13 = sshll.u32 (!%p4507_p5), %s4008_s10, 3 }
  0x76   : > { %s323_s15 = scalar_lea.sflag (!%p4507_p5), [#allocation3], %s4008_s10  ;;  %s326_s12 = scalar_lea.vmem (!%p4507_p5), [#allocation2], %s4011_s13 }
  0x7a   : > { %3738 = dma.done.wait (%p4508_p8), %s323_s15, 128  }
  0x7b   : > { %3740 = vsyncadd (%p4508_p8), %s323_s15, 4294967168  ;;  %s331_s9 = sand.u32 1, %s3849_s28   ;;  %s3016_s22 = sshll.u32 %s4008_s10, 4 }
  0x7c   : > { %s332_s3 = scalar_lea.sflag [#allocation6], %s331_s9  ;;  %s4021_s21 = scalar_lea.vmem [#allocation5], %s3016_s22 }
  0x7d   : > { %3742 = dma.done.wait (%p4508_p8), %s332_s3, 256  }
  0x7e   : > { %3744 = vsyncadd (%p4508_p8), %s332_s3, 4294967040  ;;  %p4509_p2 = scmp.eq.s32.totalorder %s3849_s28, 0 }
  0x80   : > { %3746 = dma.done.wait (%p4509_p2), [#allocation6], 512   ;;  %p4510_p3 = pmov %p4509_p2 }
  0x81   : > { %p4511_p7 = pmov %p4509_p2 }
  0x82   : > { %3748 = vsyncadd (%p4510_p3), [#allocation6], 4294966784 }
  0x83   : > { %3750 = dma.done.wait (%p4511_p7), [#allocation9], 1024   ;;  %p4512_p1 = pmov %p4509_p2 }
  0x84   : > { %v3784_v0 = vmov 0.0   ;;  %vm3785_vm0 = vmmov 0   ;;  %vm404_vm1 = vcmask 261120   ;;  %v394_v1 = vld [vmem:[#allocation7 + $0x18] sm:$0xff]  ;;  %v393_v2 = vld [vmem:[#allocation7 + $0x10] sm:$0xff]  ;;  %v392_v3 = vld [vmem:[#allocation7 + $0x8] sm:$0xff] }
  0x85   : > { %3752 = vsyncadd (%p4512_p1), [#allocation9], 4294966272  ;;  %3156 = vmatprep.subr.mxu0 %v3784_v0  ;;  %3167 = vmatprep.subr.mxu1 %v3784_v0  ;;  %v4041_v4 = vand.u32 4294901760, %v394_v1  ;;  %v4043_v5 = vand.u32 4294901760, %v393_v2  ;;  %v4045_v6 = vand.u32 4294901760, %v392_v3  ;;  %v391_v7 = vld [vmem:[#allocation7] sm:$0xff] }
  0x86   : > { %3164 = vmatprep.mubr.msk.f32.mxu0 %vm3785_vm0, %v3784_v0  ;;  %3175 = vmatprep.mubr.msk.f32.mxu1 %vm3785_vm0, %v3784_v0  ;;  %v388_v8 = vld [vmem:[%s326_s12] sm:$0xff]  ;;  %v4047_v9 = vand.u32 4294901760, %v391_v7  ;;  %v4126_v36 = vld [vmem:[%s4021_s21] sm:$0xff]  ;;  %vm1361_vm2 = vcmask 130048   ;;  %s387_s30 = scalar_lea.vmem [#allocation12], %s4011_s13  ;;  %s3025_s19 = sshll.u32 %s3849_s28, 7 }
  0x87   : > { %v406_v10 = vsel %vm404_vm1, %v388_v8, 0  ;;  %3157 = vmatpush3.msra.mxu0 %v4041_v4  ;;  %v513_v11 = vsub.f32 %v394_v1, %v4041_v4  ;;  %v520_v13 = vsub.f32 %v393_v2, %v4043_v5  ;;  %v527_v14 = vsub.f32 %v392_v3, %v4045_v6  ;;  %v4121_v32 = vld [vmem:[%s4021_s21 + $0x8] sm:$0xff]  ;;  %s2848_s29 = scalar_lea.hbm %s4488_s7, %s3025_s19  ;;  %s2850_s11 = sshll.u32 %s387_s30, 4  ;;  %s2851_s11 = int_to_ptr.vmem [resolvable:$true] %s2850_s11 }
  0x88   : > { %v4052_v12 = vand.u32 4294901760, %v406_v10  ;;  %3158 = vmatprep.subr.mxu0 %v3784_v0  ;;  %v534_v15 = vsub.f32 %v391_v7, %v4047_v9  ;;  %v900_v33 = vsel %vm404_vm1, %v4121_v32, 0  ;;  %v897_v37 = vsel %vm404_vm1, %v4126_v36, 0  ;;  %s2824_s16 = scalar_lea.sflag [#allocation13], %s4008_s10  ;;  %s3669_s18 = scalar_lea.vmem %s2851_s11, 128 }
  0x89   : > { %3159 = vmatpush3.msra.mxu0 %v4043_v5  ;;  %v514_v16 = vand.u32 4294901760, %v513_v11  ;;  %v521_v18 = vand.u32 4294901760, %v520_v13  ;;  %v528_v19 = vand.u32 4294901760, %v527_v14  ;;  %v931_v34 = vand.u32 4294901760, %v900_v33  ;;  %p3670_p12 = scmp.ne.s32.totalorder %s2851_s11, %s3669_s18  ;;  %p4513_p9 = scmp.ne.s32.totalorder %s4503_s20, 0 }
  0x8a   : > { %v4060_v17 = vsub.f32 %v406_v10, %v4052_v12  ;;  %3160 = vmatprep.subr.mxu0 %v3784_v0  ;;  %v535_v20 = vand.u32 4294901760, %v534_v15  ;;  %v934_v39 = vand.u32 4294901760, %v897_v37  ;;  %v4157_v7 = vand.u32 4294901760, %v4126_v36  ;;  %s3786_s15 = smov [#allocation12]  }
  0x8b   : > { %3161 = vmatpush3.msra.mxu0 %v4045_v6  ;;  %v515_v21 = vsub.f32 %v513_v11, %v514_v16  ;;  %v522_v23 = vsub.f32 %v520_v13, %v521_v18  ;;  %v529_v24 = vsub.f32 %v527_v14, %v528_v19  ;;  %v1009_v35 = vsub.f32 %v900_v33, %v931_v34  ;;  %p3671_p13 = pnand %p3670_p12, %p4513_p9  ;;  %s3673_s12 = sshll.u32 %s3786_s15, 4  ;;  %s3674_s12 = int_to_ptr.vmem [resolvable:$false] %s3673_s12 }
  0x8c   : > { %v4065_v22 = vand.u32 4294901760, %v4060_v17  ;;  %3162 = vmatprep.subr.mxu0 %v3784_v0  ;;  %v536_v28 = vsub.f32 %v534_v15, %v535_v20  ;;  %v1016_v41 = vsub.f32 %v897_v37, %v934_v39  ;;  %s3675_s9 = scalar_lea.vmem %s3674_s12, 256  ;;  %p3676_p11 = scmp.lt.s32.totalorder %s2851_s11, %s3674_s12 }
  0x8d   : > { %3163 = vmatpush3.msra.mxu0 %v4047_v9  ;;  %v516_v25 = vand.u32 4294901760, %v515_v21  ;;  %v523_v27 = vand.u32 4294901760, %v522_v23  ;;  %v530_v30 = vand.u32 4294901760, %v529_v24  ;;  %v1010_v38 = vand.u32 4294901760, %v1009_v35  ;;  %p3672_p0 = pneg %p3671_p13  ;;  %p3677_p10 = scmp.lt.s32.totalorder %s3675_s9, %s3669_s18 }
  0x8e   : > { %v480_v26 = vsub.f32 %v4060_v17, %v4065_v22  ;;  %3178 = vmatprep.subr.mxu0 %v3784_v0  ;;  %v537_v31 = vand.u32 4294901760, %v536_v28  ;;  %v1017_v43 = vand.u32 4294901760, %v1016_v41 }
  0x8f   : > { %3168 = vmatpush3.msra.mxu1 %v516_v25  ;;  %v1011_v40 = vsub.f32 %v1009_v35, %v1010_v38  ;;  %p3678_p4 = por %p3677_p10, %p3676_p11 }
  0x90   : > { %v4072_v29 = vand.u32 4294901760, %v480_v26  ;;  %3169 = vmatprep.subr.mxu1 %v3784_v0  ;;  %v1018_v44 = vsub.f32 %v1016_v41, %v1017_v43 }
  0x91   : > { %3170 = vmatpush3.msra.mxu1 %v523_v27  ;;  %v1012_v42 = vand.u32 4294901760, %v1011_v40  ;;  %p3679_p6 = pnand %p3678_p4, %p3672_p0 }
  0x92   : > { %3165 = vmatmul.mubr.f32.vlgmr.msra.gmra.mxu0 %v4072_v29  ;;  %3171 = vmatprep.subr.mxu1 %v3784_v0  ;;  %v1019_v45 = vand.u32 4294901760, %v1018_v44 }
  0x93   : > { %3179 = vmatpush3.msra.mxu0 %v513_v11  ;;  %3172 = vmatpush3.msra.mxu1 %v530_v30 }
  0x94   : > { %3180 = vmatprep.subr.mxu0 %v3784_v0  ;;  %3173 = vmatprep.subr.mxu1 %v3784_v0 }
  0x95   : > { %3181 = vmatpush3.msra.mxu0 %v520_v13  ;;  %3174 = vmatpush3.msra.mxu1 %v537_v31 }
  0x96   : > { %3182 = vmatprep.subr.mxu0 %v3784_v0  ;;  %3176 = vmatmul.mubr.f32.vlgmr.msra.gmra.mxu1 %v4052_v12 }
  0x97   : > { %3183 = vmatpush3.msra.mxu0 %v527_v14  ;;  %3189 = vmatprep.subr.mxu1 %v3784_v0 }
  0x98   : > { %3184 = vmatprep.subr.mxu0 %v3784_v0  ;;  %3186 = vmatprep.mubr.msk.f32.mxu0 %vm3785_vm0, %v3784_v0 }
  0x99   : > { %3185 = vmatpush3.msra.mxu0 %v534_v15  ;;  %3190 = vmatpush3.msra.mxu1 %v4041_v4 }
  0x9a   : > { %3187 = vmatmul.mubr.f32.vlgmr.msra.gmra.mxu0 %v4060_v17  ;;  %3191 = vmatprep.subr.mxu1 %v3784_v0 }
  0x9b   : > { %3200 = vmatprep.subr.mxu0 %v3784_v0  ;;  %3192 = vmatpush3.msra.mxu1 %v4043_v5 }
  0x9c   : > { %3201 = vmatpush3.msra.mxu0 %v514_v16  ;;  %3193 = vmatprep.subr.mxu1 %v3784_v0 }
  0x9d   : > { %3202 = vmatprep.subr.mxu0 %v3784_v0  ;;  %3194 = vmatpush3.msra.mxu1 %v4045_v6 }
  0x9e   : > { %3203 = vmatpush3.msra.mxu0 %v521_v18  ;;  %3195 = vmatprep.subr.mxu1 %v3784_v0 }
  0x9f   : > { %3204 = vmatprep.subr.mxu0 %v3784_v0  ;;  %3196 = vmatpush3.msra.mxu1 %v4047_v9 }
  0xa0   : > { %3197 = vmatprep.mubr.msk.f32.mxu1 %vm3785_vm0, %v3784_v0  ;;  %3205 = vmatpush3.msra.mxu0 %v528_v19 }
  0xa1   : > { %3198 = vmatmul.mubr.f32.vlgmr.msra.gmra.mxu1 %v4065_v22  ;;  %3206 = vmatprep.subr.mxu0 %v3784_v0 }
  0xa2   : > { %3211 = vmatprep.subr.mxu1 %v3784_v0  ;;  %3207 = vmatpush3.msra.mxu0 %v535_v20 }
  0xa3   : > { %3208 = vmatprep.mubr.msk.f32.mxu0 %vm3785_vm0, %v3784_v0  ;;  %3212 = vmatpush3.msra.mxu1 %v4041_v4 }
  0xa4   : > { %3209 = vmatmul.mubr.f32.vlgmr.msra.gmra.mxu0 %v4052_v12  ;;  %3213 = vmatprep.subr.mxu1 %v3784_v0 }
  0xa5   : > { %3219 = vmatprep.mubr.msk.f32.mxu1 %vm3785_vm0, %v3784_v0  ;;  %3214 = vmatpush3.msra.mxu1 %v4043_v5 }
  0xa6   : > { %3222 = vmatprep.subr.mxu0 %v3784_v0  ;;  %3215 = vmatprep.subr.mxu1 %v3784_v0 }
  0xa7   : > { %3226 = vmatprep.mubr.msk.f32.mxu0 %vm3785_vm0, %v3784_v0  ;;  %3216 = vmatpush3.msra.mxu1 %v4045_v6  ;;  %v4154_v6 = vand.u32 4294901760, %v4121_v32 }
  0xa8   : > { %3217 = vmatprep.subr.mxu1 %v3784_v0  ;;  %3223 = vmatpush3.xpose.msra.mxu0 %v931_v34 }
  0xa9   : > { %3218 = vmatpush3.msra.mxu1 %v4047_v9  ;;  %3224 = vmatprep.subr.mxu0 %v3784_v0  ;;  %v4169_v37 = vsub.f32 %v4121_v32, %v4154_v6 }
  0xaa   : > { %3220 = vmatmul.mubr.f32.vlgmr.msra.gmra.mxu1 %v4052_v12  ;;  %3229 = vmatprep.subr.mxu1 %v3784_v0 }
  0xab   : > { %3233 = vmatprep.mubr.msk.f32.mxu1 %vm3785_vm0, %v3784_v0  ;;  %3230 = vmatpush3.xpose.msra.mxu1 %v1012_v42 }
  0xac   : > { %3225 = vmatpush3.xpose.msra.mxu0 %v934_v39  ;;  %3231 = vmatprep.subr.mxu1 %v3784_v0 }
  0xad   : > { %3236 = vmatprep.subr.mxu0 %v3784_v0 }
  0xaf   : > { %3232 = vmatpush3.xpose.msra.mxu1 %v1019_v45 }
  0xb0   : > { %3243 = vmatprep.subr.mxu1 %v3784_v0 }
 0x152   : > { %v483_v46 = vpop.f32.mrf.mxu0 }
 0x154   : > { %v3166_v47 = vpop.f32.mrf.mxu0 }
 0x156   : > { %v574_v48 = vpop.f32.mrf.mxu1 }
 0x157   : > { %v575_v52 = vadd.f32 %v574_v48, %v483_v46  ;;  %v401_v46 = vld [vmem:[#allocation10 + $0x10] sm:$0xff] }
 0x158   : > { %v3177_v49 = vpop.f32.mrf.mxu1 }
 0x15a   : > { %v654_v50 = vpop.f32.mrf.mxu0 }
 0x15b   : > { %v655_v55 = vadd.f32 %v654_v50, %v575_v52  ;;  %v4190_v50 = vand.u32 4294901760, %v401_v46 }
 0x15c   : > { %v3188_v51 = vpop.f32.mrf.mxu0 }
 0x15d   : > { %v400_v51 = vld [vmem:[#allocation10 + $0x8] sm:$0xff] }
 0x161   : > { %v731_v53 = vpop.f32.mrf.mxu1 }
 0x162   : > { %v732_v57 = vadd.f32 %v731_v53, %v655_v55  ;;  %v399_v55 = vld [vmem:[#allocation10] sm:$0xff] }
 0x163   : > { %v3199_v54 = vpop.f32.mrf.mxu1 }
 0x164   : > { %v814_v56 = vpop.f32.mrf.mxu0  ;;  %v4197_v54 = vand.u32 4294901760, %v400_v51 }
 0x165   : > { %v815_v59 = vadd.f32 %v814_v56, %v732_v57  ;;  %v4201_v57 = vsub.f32 %v401_v46, %v4190_v50 }
 0x166   : > { %v3210_v58 = vpop.f32.mrf.mxu0 }
 0x16a   : > { %v889_v60 = vpop.f32.mrf.mxu1 }
 0x16b   : > { %v890_v61 = vadd.f32 %v889_v60, %v815_v59  ;;  %v4206_v59 = vand.u32 4294901760, %v399_v55 }
 0x16c   : > { %v3221_v62 = vpop.f32.mrf.mxu1 }
 0x16d   : > { %v894_v63 = vsel %vm404_vm1, %v890_v61, 0  ;;  %v4210_v61 = vsub.f32 %v400_v51, %v4197_v54 }
 0x16e   : > { %v969_v1 = vand.u32 4294901760, %v894_v63 }
 0x170   : > { %v970_v2 = vsub.f32 %v894_v63, %v969_v1  ;;  %3234 = vmatmul.mubr.f32.vlgmr.msra.gmra.mxu1 %v969_v1  ;;  %v1948_v63 = vand.u32 4294901760, %v4201_v57 }
 0x171   : > { %3244 = vmatpush3.xpose.msra.mxu1 %v931_v34  ;;  %3247 = vmatprep.mubr.msk.f32.mxu1 %vm3785_vm0, %v3784_v0 }
 0x172   : > { %3245 = vmatprep.subr.mxu1 %v3784_v0  ;;  %v971_v3 = vand.u32 4294901760, %v970_v2 }
 0x174   : > { %v972_v4 = vsub.f32 %v970_v2, %v971_v3 }
 0x175   : > { %3246 = vmatpush3.xpose.msra.mxu1 %v934_v39 }
 0x176   : > { %3257 = vmatprep.subr.mxu1 %v3784_v0  ;;  %v973_v5 = vand.u32 4294901760, %v972_v4  ;;  %v1955_v4 = vand.u32 4294901760, %v4210_v61 }
 0x178   : > { %3248 = vmatmul.mubr.f32.vlgmr.msra.gmra.mxu1 %v971_v3  ;;  %3227 = vmatmul.mubr.f32.vlgmr.msra.gmra.mxu0 %v973_v5 }
 0x179   : > { %3237 = vmatpush3.xpose.msra.mxu0 %v1009_v35  ;;  %3258 = vmatpush3.xpose.msra.mxu1 %v931_v34 }
 0x17a   : > { %3238 = vmatprep.subr.mxu0 %v3784_v0  ;;  %3259 = vmatprep.subr.mxu1 %v3784_v0 }
 0x17b   : > { %3240 = vmatprep.mubr.msk.f32.mxu0 %vm3785_vm0, %v3784_v0  ;;  %3261 = vmatprep.mubr.msk.f32.mxu1 %vm3785_vm0, %v3784_v0 }
 0x17d   : > { %3239 = vmatpush3.xpose.msra.mxu0 %v1016_v41  ;;  %3260 = vmatpush3.xpose.msra.mxu1 %v934_v39  ;;  %v1484_v39 = vand.u32 4294901760, %v4169_v37 }
 0x17e   : > { %3250 = vmatprep.subr.mxu0 %v3784_v0  ;;  %3271 = vmatprep.subr.mxu1 %v3784_v0 }
 0x17f   : > { %v1485_v41 = vsub.f32 %v4169_v37, %v1484_v39 }
 0x180   : > { %3241 = vmatmul.mubr.f32.vlgmr.msra.gmra.mxu0 %v970_v2  ;;  %3262 = vmatmul.mubr.f32.vlgmr.msra.gmra.mxu1 %v969_v1  ;;  %v4222_v2 = vsub.f32 %v399_v55, %v4206_v59 }
 0x181   : > { %3251 = vmatpush3.xpose.msra.mxu0 %v1010_v38  ;;  %3254 = vmatprep.mubr.msk.f32.mxu0 %vm3785_vm0, %v3784_v0  ;;  %v4173_v38 = vsub.f32 %v4126_v36, %v4157_v7  ;;  %v402_v36 = vld [vmem:[#allocation10 + $0x18] sm:$0xff] }
 0x182   : > { %3252 = vmatprep.subr.mxu0 %v3784_v0  ;;  %3275 = vmatprep.mubr.msk.f32.mxu1 %vm3785_vm0, %v3784_v0  ;;  %v4185_v45 = vand.u32 4294901760, %v402_v36 }
 0x183   : > { %v1491_v40 = vand.u32 4294901760, %v4173_v38 }
 0x184   : > { %v4188_v49 = vsub.f32 %v402_v36, %v4185_v45 }
 0x185   : > { %3253 = vmatpush3.xpose.msra.mxu0 %v1017_v43  ;;  %v1492_v42 = vsub.f32 %v4173_v38, %v1491_v40  ;;  %v1486_v43 = vand.u32 4294901760, %v1485_v41 }
 0x186   : > { %3264 = vmatprep.subr.mxu0 %v3784_v0  ;;  %v1941_v56 = vand.u32 4294901760, %v4188_v49 }
 0x187   : > { %v1493_v44 = vand.u32 4294901760, %v1492_v42  ;;  %3272 = vmatpush3.msra.mxu1 %v1486_v43 }
 0x188   : > { %3255 = vmatmul.mubr.f32.vlgmr.msra.gmra.mxu0 %v969_v1  ;;  %3273 = vmatprep.subr.mxu1 %v3784_v0  ;;  %v1942_v62 = vsub.f32 %v4188_v49, %v1941_v56 }
 0x189   : > { %3265 = vmatpush3.msra.mxu0 %v4154_v6  ;;  %3268 = vmatprep.mubr.msk.f32.mxu0 %vm3785_vm0, %v3784_v0 }
 0x18a   : > { %3266 = vmatprep.subr.mxu0 %v3784_v0  ;;  %3274 = vmatpush3.msra.mxu1 %v1493_v44  ;;  %v1943_v5 = vand.u32 4294901760, %v1942_v62 }
 0x18b   : > { %3267 = vmatpush3.msra.mxu0 %v4157_v7  ;;  %3285 = vmatprep.subr.mxu1 %v3784_v0 }
 0x18c   : > { %3278 = vmatprep.subr.mxu0 %v3784_v0 }
 0x230   : > { %v1056_v8 = vpop.f32.mrf.mxu1 }
 0x232   : > { %v3235_v9 = vpop.f32.mrf.mxu1 }
 0x238   : > { %v1207_v10 = vpop.f32.mrf.mxu1  ;;  %v975_v11 = vpop.f32.mrf.mxu0 }
 0x239   : > { %v1057_v18 = vadd.f32 %v1056_v8, %v975_v11  ;;  %v1949_v8 = vsub.f32 %v4201_v57, %v1948_v63 }
 0x23a   : > { %v3249_v13 = vpop.f32.mrf.mxu1  ;;  %v3228_v14 = vpop.f32.mrf.mxu0 }
 0x23b   : > { %v1950_v9 = vand.u32 4294901760, %v1949_v8 }
 0x240   : > { %v1132_v15 = vpop.f32.mrf.mxu0  ;;  %v1357_v16 = vpop.f32.mrf.mxu1 }
 0x241   : > { %v1133_v21 = vadd.f32 %v1132_v15, %v1057_v18 }
 0x242   : > { %v3242_v19 = vpop.f32.mrf.mxu0  ;;  %v3263_v20 = vpop.f32.mrf.mxu1 }
 0x243   : > { %v1208_v23 = vadd.f32 %v1207_v10, %v1133_v21  ;;  %v395_v20 = vld [vmem:[#allocation8] sm:$0xff] }
 0x248   : > { %v1284_v24 = vpop.f32.mrf.mxu0 }
 0x249   : > { %v1285_v25 = vadd.f32 %v1284_v24, %v1208_v23 }
 0x24a   : > { %v3256_v26 = vpop.f32.mrf.mxu0 }
 0x24b   : > { %v1358_v27 = vadd.f32 %v1357_v16, %v1285_v25  ;;  %v4346_v25 = vand.u32 4294901760, %v395_v20 }
 0x24d   : > { %v1362_v28 = vsel %vm1361_vm2, %v1358_v27, -inf }
 0x24e   : > { %1363 = vmax.xlane.f32.xlu0 %v1362_v28 }
 0x2d7   : > { %v1364_v30 = vpop.xlane.xlu0 %1363 }
 0x2d8   : > { %v1365_v31 = vsub.f32 %v1358_v27, %v1364_v30  ;;  %v4355_v30 = vsub.f32 %v395_v20, %v4346_v25 }
 0x2da   : > { %v1366_v33 = vmul.f32 1.442695, %v1365_v31 }
 0x2dc   : > { %3529 = vpow2.f32 %v1366_v33 }
 0x2e9   : > { %v3530_v34 = vpop.eup %3529 }
 0x2ea   : > { %v1368_v35 = vsel %vm1361_vm2, %v3530_v34, 0.0 }
 0x2eb   : > { %1369 = vadd.xlane.f32.xlu0 %v1368_v35 }
 0x374   : > { %v1370_v32 = vpop.xlane.xlu0 %1369 }
 0x375   : > { %3531 = vrcp.f32 %v1370_v32 }
 0x382   : > { %v3532_v47 = vpop.eup %3531 }
 0x383   : > { %v1372_v48 = vmul.f32 %v3532_v47, %v3530_v34  ;;  %v2450_v34 = vand.u32 4294901760, %v4355_v30 }
 0x385   : > { %v1374_v52 = vsel %vm1361_vm2, %v1372_v48, 0  ;;  %2817 = vst.msk [vmem:[%s387_s30] sm:$0xff] %vm1361_vm2, %v1372_v48 }
 0x386   : > { %v1443_v53 = vand.u32 4294901760, %v1374_v52 }
 0x388   : > { %v1444_v58 = vsub.f32 %v1374_v52, %v1443_v53  ;;  %3276 = vmatmul.mubr.f32.vlgmr.msra.gmra.mxu1 %v1443_v53 }
 0x389   : > { %3286 = vmatpush3.msra.mxu1 %v4154_v6  ;;  %3289 = vmatprep.mubr.msk.f32.mxu1 %vm3785_vm0, %v3784_v0 }
 0x38a   : > { %3287 = vmatprep.subr.mxu1 %v3784_v0  ;;  %v1445_v60 = vand.u32 4294901760, %v1444_v58 }
 0x38b   : > { %3288 = vmatpush3.msra.mxu1 %v4157_v7 }
 0x38c   : > { %3290 = vmatmul.mubr.f32.vlgmr.msra.gmra.mxu1 %v1445_v60  ;;  %3299 = vmatprep.subr.mxu1 %v3784_v0  ;;  %v1446_v1 = vsub.f32 %v1444_v58, %v1445_v60 }
 0x38d   : > { %3300 = vmatpush3.msra.mxu1 %v4154_v6  ;;  %3303 = vmatprep.mubr.msk.f32.mxu1 %vm3785_vm0, %v3784_v0  ;;  %v1962_v6 = vand.u32 4294901760, %v4222_v2 }
 0x38e   : > { %3301 = vmatprep.subr.mxu1 %v3784_v0  ;;  %v1447_v3 = vand.u32 4294901760, %v1446_v1 }
 0x38f   : > { %3302 = vmatpush3.msra.mxu1 %v4157_v7  ;;  %v1956_v7 = vsub.f32 %v4210_v61, %v1955_v4  ;;  %v1963_v10 = vsub.f32 %v4222_v2, %v1962_v6 }
 0x390   : > { %3269 = vmatmul.mubr.f32.vlgmr.msra.gmra.mxu0 %v1447_v3  ;;  %3304 = vmatmul.mubr.f32.vlgmr.msra.gmra.mxu1 %v1443_v53 }
 0x391   : > { %3279 = vmatpush3.msra.mxu0 %v4169_v37  ;;  %3282 = vmatprep.mubr.msk.f32.mxu0 %vm3785_vm0, %v3784_v0  ;;  %v1957_v11 = vand.u32 4294901760, %v1956_v7  ;;  %v1964_v13 = vand.u32 4294901760, %v1963_v10  ;;  %v2451_v37 = vsub.f32 %v4355_v30, %v2450_v34 }
 0x392   : > { %3280 = vmatprep.subr.mxu0 %v3784_v0  ;;  %3317 = vmatprep.subr.mxu1 %v3784_v0 }
 0x393   : > { %3281 = vmatpush3.msra.mxu0 %v4173_v38  ;;  %3318 = vmatpush3.msra.mxu1 %v1943_v5  ;;  %v2452_v38 = vand.u32 4294901760, %v2451_v37 }
 0x394   : > { %3292 = vmatprep.subr.mxu0 %v3784_v0  ;;  %3283 = vmatmul.mubr.f32.vlgmr.msra.gmra.mxu0 %v1444_v58 }
 0x395   : > { %3293 = vmatpush3.msra.mxu0 %v1484_v39  ;;  %3296 = vmatprep.mubr.msk.f32.mxu0 %vm3785_vm0, %v3784_v0 }
 0x396   : > { %3294 = vmatprep.subr.mxu0 %v3784_v0  ;;  %3319 = vmatprep.subr.mxu1 %v3784_v0 }
 0x397   : > { %3295 = vmatpush3.msra.mxu0 %v1491_v40  ;;  %3320 = vmatpush3.msra.mxu1 %v1950_v9 }
 0x398   : > { %3297 = vmatmul.mubr.f32.vlgmr.msra.gmra.mxu0 %v1443_v53  ;;  %3306 = vmatprep.subr.mxu0 %v3784_v0 }
 0x399   : > { %3307 = vmatpush3.msra.mxu0 %v4185_v45  ;;  %3321 = vmatprep.subr.mxu1 %v3784_v0 }
 0x39a   : > { %3308 = vmatprep.subr.mxu0 %v3784_v0  ;;  %3322 = vmatpush3.msra.mxu1 %v1957_v11 }
 0x39b   : > { %3309 = vmatpush3.msra.mxu0 %v4190_v50  ;;  %3323 = vmatprep.subr.mxu1 %v3784_v0 }
 0x39c   : > { %3310 = vmatprep.subr.mxu0 %v3784_v0  ;;  %3314 = vmatprep.mubr.msk.f32.mxu0 %vm3785_vm0, %v3784_v0 }
 0x39d   : > { %3311 = vmatpush3.msra.mxu0 %v4197_v54  ;;  %3324 = vmatpush3.msra.mxu1 %v1964_v13 }
 0x39e   : > { %3312 = vmatprep.subr.mxu0 %v3784_v0  ;;  %3325 = vmatprep.mubr.msk.f32.mxu1 %vm3785_vm0, %v3784_v0 }
 0x39f   : > { %3313 = vmatpush3.msra.mxu0 %v4206_v59  ;;  %3339 = vmatprep.subr.mxu1 %v3784_v0 }
 0x3a0   : > { %3328 = vmatprep.subr.mxu0 %v3784_v0  ;;  %3315 = vmatmul.mubr.f32.vlgmr.msra.gmra.mxu0 %v4072_v29  ;;  %v397_v29 = vld [vmem:[#allocation8 + $0x10] sm:$0xff] }
 0x3a1   : > { %3329 = vmatpush3.msra.mxu0 %v4188_v49  ;;  %3326 = vmatmul.mubr.f32.vlgmr.msra.gmra.mxu1 %v4052_v12  ;;  %v4327_v15 = vand.u32 4294901760, %v397_v29 }
 0x3a2   : > { %3330 = vmatprep.subr.mxu0 %v3784_v0  ;;  %3340 = vmatpush3.msra.mxu1 %v4185_v45 }
 0x3a3   : > { %3331 = vmatpush3.msra.mxu0 %v4201_v57  ;;  %3341 = vmatprep.subr.mxu1 %v3784_v0  ;;  %v4333_v18 = vsub.f32 %v397_v29, %v4327_v15 }
 0x3a4   : > { %3332 = vmatprep.subr.mxu0 %v3784_v0  ;;  %3342 = vmatpush3.msra.mxu1 %v4190_v50 }
 0x3a5   : > { %3333 = vmatpush3.msra.mxu0 %v4210_v61  ;;  %3343 = vmatprep.subr.mxu1 %v3784_v0  ;;  %v2436_v23 = vand.u32 4294901760, %v4333_v18 }
 0x3a6   : > { %3334 = vmatprep.subr.mxu0 %v3784_v0  ;;  %3344 = vmatpush3.msra.mxu1 %v4197_v54 }
 0x3a7   : > { %3335 = vmatpush3.msra.mxu0 %v4222_v2  ;;  %3345 = vmatprep.subr.mxu1 %v3784_v0  ;;  %v2437_v27 = vsub.f32 %v4333_v18, %v2436_v23 }
 0x3a8   : > { %3336 = vmatprep.mubr.msk.f32.mxu0 %vm3785_vm0, %v3784_v0  ;;  %3346 = vmatpush3.msra.mxu1 %v4206_v59 }
 0x3a9   : > { %3350 = vmatprep.subr.mxu0 %v3784_v0  ;;  %3337 = vmatmul.mubr.f32.vlgmr.msra.gmra.mxu0 %v4060_v17  ;;  %v398_v17 = vld [vmem:[#allocation8 + $0x18] sm:$0xff]  ;;  %v2438_v31 = vand.u32 4294901760, %v2437_v27 }
 0x3aa   : > { %3347 = vmatprep.mubr.msk.f32.mxu1 %vm3785_vm0, %v3784_v0  ;;  %3351 = vmatpush3.msra.mxu0 %v1941_v56 }
 0x3ab   : > { %3361 = vmatprep.subr.mxu1 %v3784_v0  ;;  %3348 = vmatmul.mubr.f32.vlgmr.msra.gmra.mxu1 %v4065_v22  ;;  %v4322_v22 = vand.u32 4294901760, %v398_v17 }
 0x3ac   : > { %3352 = vmatprep.subr.mxu0 %v3784_v0  ;;  %3362 = vmatpush3.msra.mxu1 %v4185_v45 }
 0x3ad   : > { %3353 = vmatpush3.msra.mxu0 %v1948_v63  ;;  %3363 = vmatprep.subr.mxu1 %v3784_v0  ;;  %v4325_v14 = vsub.f32 %v398_v17, %v4322_v22 }
 0x3ae   : > { %3354 = vmatprep.subr.mxu0 %v3784_v0  ;;  %3364 = vmatpush3.msra.mxu1 %v4190_v50 }
 0x3af   : > { %3355 = vmatpush3.msra.mxu0 %v1955_v4  ;;  %3365 = vmatprep.subr.mxu1 %v3784_v0  ;;  %v2429_v16 = vand.u32 4294901760, %v4325_v14 }
 0x3b0   : > { %3356 = vmatprep.subr.mxu0 %v3784_v0  ;;  %3366 = vmatpush3.msra.mxu1 %v4197_v54 }
 0x3b1   : > { %3357 = vmatpush3.msra.mxu0 %v1962_v6  ;;  %3358 = vmatprep.mubr.msk.f32.mxu0 %vm3785_vm0, %v3784_v0  ;;  %v2430_v21 = vsub.f32 %v4325_v14, %v2429_v16 }
 0x3b2   : > { %3367 = vmatprep.subr.mxu1 %v3784_v0  ;;  %3359 = vmatmul.mubr.f32.vlgmr.msra.gmra.mxu0 %v4052_v12 }
 0x3b3   : > { %3368 = vmatpush3.msra.mxu1 %v4206_v59  ;;  %3369 = vmatprep.mubr.msk.f32.mxu1 %vm3785_vm0, %v3784_v0  ;;  %v2431_v26 = vand.u32 4294901760, %v2430_v21 }
 0x3b4   : > { %3383 = vmatprep.subr.mxu1 %v3784_v0  ;;  %3370 = vmatmul.mubr.f32.vlgmr.msra.gmra.mxu1 %v4052_v12  ;;  %v396_v12 = vld [vmem:[#allocation8 + $0x8] sm:$0xff] }
 0x3b5   : > { %3372 = vmatprep.subr.mxu0 %v3784_v0  ;;  %3391 = vmatprep.mubr.msk.f32.mxu1 %vm3785_vm0, %v3784_v0  ;;  %v4335_v19 = vand.u32 4294901760, %v396_v12 }
 0x3b6   : > { %3380 = vmatprep.mubr.msk.f32.mxu0 %vm3785_vm0, %v3784_v0  ;;  %3373 = vmatpush3.msra.mxu0 %v4322_v22 }
 0x3b7   : > { %3374 = vmatprep.subr.mxu0 %v3784_v0  ;;  %v4344_v24 = vsub.f32 %v396_v12, %v4335_v19  ;;  %3384 = vmatpush3.msra.mxu1 %v2431_v26 }
 0x3b8   : > { %3375 = vmatpush3.msra.mxu0 %v4327_v15  ;;  %3385 = vmatprep.subr.mxu1 %v3784_v0 }
 0x3b9   : > { %3376 = vmatprep.subr.mxu0 %v3784_v0  ;;  %v2443_v28 = vand.u32 4294901760, %v4344_v24  ;;  %3386 = vmatpush3.msra.mxu1 %v2438_v31 }
 0x3ba   : > { %3377 = vmatpush3.msra.mxu0 %v4335_v19  ;;  %3387 = vmatprep.subr.mxu1 %v3784_v0 }
 0x3bb   : > { %3378 = vmatprep.subr.mxu0 %v3784_v0  ;;  %v2444_v33 = vsub.f32 %v4344_v24, %v2443_v28 }
 0x3bc   : > { %3379 = vmatpush3.msra.mxu0 %v4346_v25 }
 0x3bd   : > { %3394 = vmatprep.subr.mxu0 %v3784_v0  ;;  %v2445_v35 = vand.u32 4294901760, %v2444_v33 }
 0x3bf   : > { %3388 = vmatpush3.msra.mxu1 %v2445_v35 }
 0x3c0   : > { %3389 = vmatprep.subr.mxu1 %v3784_v0 }
 0x3c1   : > { %3390 = vmatpush3.msra.mxu1 %v2452_v38 }
 0x3c2   : > { %3405 = vmatprep.subr.mxu1 %v3784_v0 }
 0x448   : > { %v1530_v39 = vpop.f32.mrf.mxu1 }
 0x44a   : > { %v3277_v40 = vpop.f32.mrf.mxu1 }
 0x44c   : > { %v1681_v41 = vpop.f32.mrf.mxu1 }
 0x44e   : > { %v3291_v42 = vpop.f32.mrf.mxu1 }
 0x450   : > { %v1449_v43 = vpop.f32.mrf.mxu0  ;;  %v1831_v44 = vpop.f32.mrf.mxu1 }
 0x451   : > { %v1531_v45 = vadd.f32 %v1530_v39, %v1449_v43 }
 0x452   : > { %v3270_v32 = vpop.f32.mrf.mxu0  ;;  %v3305_v36 = vpop.f32.mrf.mxu1 }
 0x454   : > { %v1606_v46 = vpop.f32.mrf.mxu0 }
 0x455   : > { %v1607_v47 = vadd.f32 %v1606_v46, %v1531_v45 }
 0x456   : > { %v3284_v48 = vpop.f32.mrf.mxu0 }
 0x457   : > { %v1682_v49 = vadd.f32 %v1681_v41, %v1607_v47 }
 0x458   : > { %v1758_v50 = vpop.f32.mrf.mxu0 }
 0x459   : > { %v1759_v51 = vadd.f32 %v1758_v50, %v1682_v49 }
 0x45a   : > { %v3298_v52 = vpop.f32.mrf.mxu0 }
 0x45b   : > { %v1832_v53 = vadd.f32 %v1831_v44, %v1759_v51 }
 0x45d   : > { %v2321_v54 = vsel %vm404_vm1, %v1832_v53, 0 }
 0x45e   : > { %v2392_v55 = vand.u32 4294901760, %v2321_v54 }
 0x460   : > { %v2393_v56 = vsub.f32 %v2321_v54, %v2392_v55  ;;  %3392 = vmatmul.mubr.f32.vlgmr.msra.gmra.mxu1 %v2392_v55  ;;  %v1910_v57 = vpop.f32.mrf.mxu0 }
 0x461   : > { %3406 = vmatpush3.msra.mxu1 %v4322_v22  ;;  %3413 = vmatprep.mubr.msk.f32.mxu1 %vm3785_vm0, %v3784_v0  ;;  %v2001_v58 = vpop.f32.mrf.mxu1 }
 0x462   : > { %3407 = vmatprep.subr.mxu1 %v3784_v0  ;;  %v2394_v59 = vand.u32 4294901760, %v2393_v56  ;;  %v3316_v60 = vpop.f32.mrf.mxu0  ;;  %v2002_v61 = vadd.f32 %v2001_v58, %v1910_v57 }
 0x463   : > { %3408 = vmatpush3.msra.mxu1 %v4327_v15  ;;  %v3327_v62 = vpop.f32.mrf.mxu1 }
 0x464   : > { %3409 = vmatprep.subr.mxu1 %v3784_v0  ;;  %v2395_v63 = vsub.f32 %v2393_v56, %v2394_v59 }
 0x465   : > { %3410 = vmatpush3.msra.mxu1 %v4335_v19 }
 0x466   : > { %3411 = vmatprep.subr.mxu1 %v3784_v0  ;;  %v2396_v1 = vand.u32 4294901760, %v2395_v63 }
 0x467   : > { %3412 = vmatpush3.msra.mxu1 %v4346_v25 }
 0x468   : > { %3414 = vmatmul.mubr.f32.vlgmr.msra.gmra.mxu1 %v2394_v59  ;;  %3427 = vmatprep.subr.mxu1 %v3784_v0 }
 0x469   : > { %3381 = vmatmul.mubr.f32.vlgmr.msra.gmra.mxu0 %v2396_v1  ;;  %3428 = vmatpush3.msra.mxu1 %v4322_v22  ;;  %v2081_v2 = vpop.f32.mrf.mxu0 }
 0x46a   : > { %3395 = vmatpush3.msra.mxu0 %v4325_v14  ;;  %3429 = vmatprep.subr.mxu1 %v3784_v0  ;;  %v2082_v3 = vadd.f32 %v2081_v2, %v2002_v61 }
 0x46b   : > { %3396 = vmatprep.subr.mxu0 %v3784_v0  ;;  %3430 = vmatpush3.msra.mxu1 %v4327_v15  ;;  %v3338_v4 = vpop.f32.mrf.mxu0  ;;  %v2158_v5 = vpop.f32.mrf.mxu1 }
 0x46c   : > { %3397 = vmatpush3.msra.mxu0 %v4333_v18  ;;  %3431 = vmatprep.subr.mxu1 %v3784_v0  ;;  %v2159_v8 = vadd.f32 %v2158_v5, %v2082_v3 }
 0x46d   : > { %3398 = vmatprep.subr.mxu0 %v3784_v0  ;;  %3432 = vmatpush3.msra.mxu1 %v4335_v19  ;;  %v3349_v6 = vpop.f32.mrf.mxu1 }
 0x46e   : > { %3399 = vmatpush3.msra.mxu0 %v4344_v24  ;;  %3433 = vmatprep.subr.mxu1 %v3784_v0 }
 0x46f   : > { %3400 = vmatprep.subr.mxu0 %v3784_v0  ;;  %3402 = vmatprep.mubr.msk.f32.mxu0 %vm3785_vm0, %v3784_v0 }
 0x470   : > { %3401 = vmatpush3.msra.mxu0 %v4355_v30  ;;  %3434 = vmatpush3.msra.mxu1 %v4346_v25 }
 0x471   : > { %3435 = vmatprep.mubr.msk.f32.mxu1 %vm3785_vm0, %v3784_v0  ;;  %3403 = vmatmul.mubr.f32.vlgmr.msra.gmra.mxu0 %v2393_v56 }
 0x472   : > { %3416 = vmatprep.subr.mxu0 %v3784_v0  ;;  %3436 = vmatmul.mubr.f32.vlgmr.msra.gmra.mxu1 %v2392_v55  ;;  %v2241_v7 = vpop.f32.mrf.mxu0 }
 0x473   : > { %3417 = vmatpush3.msra.mxu0 %v2429_v16  ;;  %3424 = vmatprep.mubr.msk.f32.mxu0 %vm3785_vm0, %v3784_v0  ;;  %v2242_v9 = vadd.f32 %v2241_v7, %v2159_v8 }
 0x474   : > { %3418 = vmatprep.subr.mxu0 %v3784_v0  ;;  %v2316_v10 = vpop.f32.mrf.mxu1  ;;  %v3360_v11 = vpop.f32.mrf.mxu0 }
 0x475   : > { %3419 = vmatpush3.msra.mxu0 %v2436_v23  ;;  %v2317_v13 = vadd.f32 %v2316_v10, %v2242_v9 }
 0x476   : > { %3420 = vmatprep.subr.mxu0 %v3784_v0  ;;  %v3371_v17 = vpop.f32.mrf.mxu1 }
 0x477   : > { %3421 = vmatpush3.msra.mxu0 %v2443_v28 }
 0x478   : > { %3422 = vmatprep.subr.mxu0 %v3784_v0 }
 0x479   : > { %3423 = vmatpush3.msra.mxu0 %v2450_v34 }
 0x47a   : > { %3425 = vmatmul.mubr.f32.vlgmr.msra.gmra.mxu0 %v2392_v55 }
 0x47b   : > { %3682 = shalt.err (!%p3679_p6)
}
 0x47c   : > { %s3683_s22 = scalar_lea.hbm %s2848_s29, 128  ;;  %s3687_s30 = scalar_lea.hbm %s4488_s7, 256 }
 0x47d   : > { %p3684_p5 = scmp.ne.s32.totalorder %s2848_s29, %s3683_s22  ;;  %p3688_p3 = scmp.lt.s32.totalorder %s2848_s29, %s4488_s7 }
 0x47e   : > { %p3689_p7 = scmp.lt.s32.totalorder %s3687_s30, %s3683_s22 }
 0x47f   : > { %p3685_p8 = pnand %p3684_p5, %p4513_p9 }
 0x480   : > { %p3690_p1 = por %p3689_p7, %p3688_p3 }
 0x481   : > { %p3686_p2 = pneg %p3685_p8 }
 0x483   : > { %p3691_p12 = pnand %p3690_p1, %p3686_p2 }
 0x485   : > { %3694 = shalt.err (!%p3691_p12)
}
 0x486   : > { %3455 = dma.vmem_to_hbm [thread:$0]  (%p4513_p9), %s2851_s11, 128, %s2848_s29, %s2824_s16   ;;  %v3022_v28 = vld [vmem:[%s4486_s5] ss:$0 sm:$0xff] }
 0x487   : > { %s380_s16 = scalar_lea.vmem [#allocation11], %s4011_s13  ;;  %s4443_s9 = scalar_lea.hbm %s4487_s6, %s3025_s19 }
 0x488   : > { %s2837_s18 = sshll.u32 %s380_s16, 4  ;;  %s2819_s22 = scalar_lea.sflag [#allocation4], %s4008_s10  ;;  %s2838_s18 = int_to_ptr.vmem [resolvable:$true] %s2837_s18 }
 0x489   : > { %s3695_s3 = scalar_lea.vmem %s2838_s18, 128  ;;  %s3787_s21 = smov [#allocation11]  }
 0x48a   : > { %p3696_p13 = scmp.ne.s32.totalorder %s2838_s18, %s3695_s3  ;;  %s3699_s30 = sshll.u32 %s3787_s21, 4  ;;  %s3700_s30 = int_to_ptr.vmem [resolvable:$false] %s3699_s30 }
 0x48b   : > { %s3701_s13 = scalar_lea.vmem %s3700_s30, 256  ;;  %p3702_p10 = scmp.lt.s32.totalorder %s2838_s18, %s3700_s30 }
 0x48c   : > { %p3697_p0 = pnand %p3696_p13, %p4513_p9  ;;  %p3703_p4 = scmp.lt.s32.totalorder %s3701_s13, %s3695_s3 }
 0x48e   : > { %p3698_p11 = pneg %p3697_p0  ;;  %p3704_p6 = por %p3703_p4, %p3702_p10 }
 0x490   : > { %p3705_p5 = pnand %p3704_p6, %p3698_p11 }
 0x520   : > { %v2489_v0 = vpop.f32.mrf.mxu1 }
 0x522   : > { %v3393_v22 = vpop.f32.mrf.mxu1 }
 0x528   : > { %v2646_v29 = vpop.f32.mrf.mxu1 }
 0x529   : > { %v2398_v14 = vpop.f32.mrf.mxu0 }
 0x52a   : > { %v3415_v15 = vpop.f32.mrf.mxu1  ;;  %v2399_v16 = vadd.f32 %v2398_v14, %v2317_v13 }
 0x52b   : > { %v3382_v12 = vpop.f32.mrf.mxu0 }
 0x52c   : > { %v2490_v20 = vadd.f32 %v2489_v0, %v2399_v16 }
 0x531   : > { %v2569_v18 = vpop.f32.mrf.mxu0 }
 0x532   : > { %v2804_v19 = vpop.f32.mrf.mxu1  ;;  %v2570_v24 = vadd.f32 %v2569_v18, %v2490_v20 }
 0x533   : > { %v3404_v21 = vpop.f32.mrf.mxu0 }
 0x534   : > { %v3437_v23 = vpop.f32.mrf.mxu1  ;;  %v2647_v25 = vadd.f32 %v2646_v29, %v2570_v24 }
 0x53a   : > { %v2729_v26 = vpop.f32.mrf.mxu0 }
 0x53b   : > { %v2730_v27 = vadd.f32 %v2729_v26, %v2647_v25 }
 0x53c   : > { %v3426_v30 = vpop.f32.mrf.mxu0 }
 0x53d   : > { %v2805_v31 = vadd.f32 %v2804_v19, %v2730_v27 }
 0x53f   : > { %v2814_v33 = vadd.f32 %v3022_v28, %v2805_v31 }
 0x541   : > { %3533 = vtanh.f32 %v2814_v33 }
 0x54e   : > { %v3534_v34 = vpop.eup %3533 }
 0x54f   : > { %2816 = vst.msk [vmem:[%s380_s16] sm:$0xff] %vm404_vm1, %v3534_v34 }
 0x550   : > { %3708 = shalt.err (!%p3705_p5)
}
 0x551   : > { %s3709_s28 = scalar_lea.hbm %s4443_s9, 128  ;;  %s3713_s23 = scalar_lea.hbm %s4487_s6, 256 }
 0x552   : > { %p3710_p8 = scmp.ne.s32.totalorder %s4443_s9, %s3709_s28  ;;  %p3714_p7 = scmp.lt.s32.totalorder %s4443_s9, %s4487_s6 }
 0x553   : > { %p3715_p1 = scmp.lt.s32.totalorder %s3713_s23, %s3709_s28 }
 0x554   : > { %p3711_p2 = pnand %p3710_p8, %p4513_p9 }
 0x555   : > { %p3716_p12 = por %p3715_p1, %p3714_p7 }
 0x556   : > { %p3712_p3 = pneg %p3711_p2 }
 0x558   : > { %p3717_p13 = pnand %p3716_p12, %p3712_p3 }
 0x55a   : > { %3720 = shalt.err (!%p3717_p13)
}
 0x55b   : > { %3454 = dma.vmem_to_hbm [thread:$0]  (%p4513_p9), %s2838_s18, 128, %s4443_s9, %s2819_s22  }
 0x55c PF: > { %s2862_s11 = sand.u32 1, %s3763_s24   ;;  %p4514_p0 = scmp.ne.s32.totalorder %s4498_s8, 0 }
 0x55d   : > { %p4515_p11 = scmp.ge.s32.totalorder %s3775_s27, 2  ;;  %s2863_s16 = scalar_lea.sflag [#allocation4], %s2862_s11 }
 0x55f   : > { %p3476_p10 = pnand %p4515_p11, %p4514_p0 }
 0x561   : > { %p3477_p4 = pneg %p3476_p10 }
 0x563   : > { %3754 = dma.done.wait (%p3477_p4), %s2863_s16, 128  }
 0x564   : > { %3756 = vsyncadd (%p3477_p4), %s2863_s16, 4294967168  ;;  %s2872_s15 = scalar_lea.sflag [#allocation13], %s2862_s11 }
 0x565   : > { %3758 = dma.done.wait (%p3477_p4), %s2872_s15, 128  }
 0x566   : > { %3760 = vsyncadd (%p3477_p4), %s2872_s15, 4294967168  ;;  %p28_p9 = scmp.ge.s32.totalorder %s3917_s14, 4   ;;  %s4516_s24 = smov %s3767_s25 }
 0x567   : > { %s4517_s25 = smov %s3771_s26  ;;  %s4518_s26 = smov %s3927_s17 }
 0x568   : > { %s4519_s27 = smov %s3917_s14  ;;  %30 = sbr.rel (!%p28_p9) target bundleno = 13 (0xd), region = 131 }
 0x56d   :  { %2877 = vsyncpa [#allocation3], 1 }
 0x56e   :  { %2879 = vsyncpa [#allocation3 + $0x1], 1 }
 0x56f   :  { %2880 = vsyncpa [#allocation6], 1 }
 0x570   :  { %2882 = vsyncpa [#allocation6 + $0x1], 1 }
 0x571   :  { %2883 = vsyncpa [#allocation9], 1 }
 0x572   :  { %2884 = vsyncpa [#allocation4], 1 }
 0x573   :  { %2886 = vsyncpa [#allocation4 + $0x1], 1 }
 0x574   :  { %2887 = vsyncpa [#allocation13], 1 }
 0x575   :  { %2889 = vsyncpa [#allocation13 + $0x1], 1 }

</bundles_post_ra>
